<compile_context>
chip_gen: v6e
topology: v6e:2x2x1
jax: 0.10.0
libtpu: 0.0.40
codegen_flags: <defaults>
</compile_context>

<pallas_src>
import functools

import jax
import jax.numpy as jnp
from jax.experimental import pallas as pl
from jax.experimental.pallas import tpu as pltpu

_LANES = 128


def _charbonnier_kernel(pred_ref, tgt_ref, out_ref, *,
                        eps2, block_rows, spp, num_blocks, total_rows):
    """Accumulates per-lane partial sums of sqrt((p-t)^2 + eps^2) into out_ref.

    out_ref is an (8, 128) f32 slab per parallel part (accumulator pattern:
    its block index only depends on the parallel axis, so it stays resident
    in VMEM across the reduction axis).
    """
    part = pl.program_id(0)
    inner = pl.program_id(1)

    @pl.when(inner == 0)
    def _():
        out_ref[...] = jnp.zeros_like(out_ref)

    p = pred_ref[...].astype(jnp.float32)
    t = tgt_ref[...].astype(jnp.float32)
    d = p - t
    val = jnp.sqrt(d * d + jnp.float32(eps2))

    block_id = part * spp + inner
    k = block_rows // 8

    # Fast path: fully-valid interior block — no masking work at all.
    @pl.when(block_id < num_blocks - 1)
    def _():
        out_ref[...] += jnp.sum(val.reshape(k, 8, _LANES), axis=0)

    # Edge path: last (possibly ragged) block and any phantom blocks created
    # by the rectangular (parallel, reduction) grid.  Only here do we build
    # the validity mask; garbage rows past the array edge are select-masked
    # before any accumulation.
    @pl.when(block_id >= num_blocks - 1)
    def _():
        rows_i = jax.lax.broadcasted_iota(jnp.int32, (block_rows, _LANES), 0)
        grow = block_id * block_rows + rows_i          # global row index
        masked = jnp.where(grow < total_rows, val, jnp.float32(0.0))
        out_ref[...] += jnp.sum(masked.reshape(k, 8, _LANES), axis=0)


def _tensorcores_per_device():
    """Best-effort count of TensorCores behind a single JAX device."""
    try:
        dev = jax.devices()[0]
    except Exception:
        return 1
    nc = getattr(dev, "num_cores", None)
    if isinstance(nc, int) and nc > 0:
        return nc
    kind = str(getattr(dev, "device_kind", "")).lower()
    # v4 and v7x expose two TensorCores behind one device (megacore).
    if "v4" in kind or "7" in kind:
        return 2
    return 1


def _input_spec(blk, index_map, n_buffers):
    """Input BlockSpec, with optional deeper pipelining (fallback-safe)."""
    if n_buffers != 2 and hasattr(pl, "Buffered"):
        try:
            return pl.BlockSpec((blk, _LANES), index_map,
                                pipeline_mode=pl.Buffered(n_buffers))
        except TypeError:
            pass
    return pl.BlockSpec((blk, _LANES), index_map)


def _charbonnier_sum_host(p, t, eps2):
    d = p.astype(jnp.float32) - t.astype(jnp.float32)
    return jnp.sum(jnp.sqrt(d * d + jnp.float32(eps2)))


def charbonnier_loss(predicted, target, epsilon=1e-08, *, block_rows=4096):
    """Pallas TPU implementation of CharbonnierLoss.forward.

    Inputs may be f32 or bf16 (pass bf16 un-upcast: the kernel is HBM-bound
    and upcasts per-tile, so half the bytes ~= half the runtime).
    """
    assert predicted.shape == target.shape
    n = predicted.size
    eps2 = float(epsilon) ** 2

    p_flat = predicted.reshape(-1)
    t_flat = target.reshape(-1)

    rows = n // _LANES              # 128-aligned prefix handled by the kernel
    tail = n - rows * _LANES        # <128 trailing elements handled on host

    if rows == 0:
        # Tiny input: no kernel launch needed.
        total = _charbonnier_sum_host(p_flat, t_flat, eps2)
        return (total / jnp.float32(n)).astype(predicted.dtype)

    # Pure views for contiguous inputs: no host pad / copy round-trip.
    p2d = p_flat[: rows * _LANES].reshape(rows, _LANES)
    t2d = t_flat[: rows * _LANES].reshape(rows, _LANES)

    # Tile: as many rows as requested, capped to the (16-rounded) total.
    # Multiple of 16 sublanes so bf16 inputs stay packing-friendly.
    blk = max(16, min(block_rows, ((rows + 15) // 16) * 16))
    blk = ((blk + 15) // 16) * 16
    num_blocks = pl.cdiv(rows, blk)

    # Only split the leading "parallel" axis when the chip really has 2 TCs.
    n_cores = _tensorcores_per_device()
    n_parts = 2 if (n_cores >= 2 and num_blocks >= 2) else 1
    spp = pl.cdiv(num_blocks, n_parts)
    n_buffers = 3 if spp >= 3 else 2

    def in_map(i, j):
        # Clamp phantom trailing blocks (rectangular grid) into bounds; their
        # contribution is fully masked out inside the kernel.
        return (jnp.minimum(i * spp + j, num_blocks - 1), 0)

    kernel = functools.partial(
        _charbonnier_kernel,
        eps2=eps2,
        block_rows=blk,
        spp=spp,
        num_blocks=num_blocks,
        total_rows=rows,
    )

    # Scoped VMEM: 2 inputs x n_buffers tiles + headroom, clamped to stay
    # comfortably inside v7x's 64 MiB physical per-TC VMEM.
    itemsize = max(p2d.dtype.itemsize, t2d.dtype.itemsize)
    tile_bytes = blk * _LANES * itemsize
    vmem_limit = int(min(48 * 2 ** 20,
                         max(32 * 2 ** 20,
                             2 * n_buffers * tile_bytes + 8 * 2 ** 20)))

    cost = pl.CostEstimate(
        flops=int(5 * rows * _LANES),
        transcendentals=int(rows * _LANES),
        bytes_accessed=int((p2d.dtype.itemsize + t2d.dtype.itemsize)
                           * rows * _LANES + n_parts * 8 * _LANES * 4),
    )

    partials = pl.pallas_call(
        kernel,
        out_shape=jax.ShapeDtypeStruct((n_parts * 8, _LANES), jnp.float32),
        grid_spec=pltpu.PrefetchScalarGridSpec(
            num_scalar_prefetch=0,
            grid=(n_parts, spp),
            in_specs=[
                _input_spec(blk, in_map, n_buffers),
                _input_spec(blk, in_map, n_buffers),
            ],
            out_specs=pl.BlockSpec((8, _LANES), lambda i, j: (i, 0)),
        ),
        compiler_params=pltpu.CompilerParams(
            dimension_semantics=("parallel", "arbitrary"),
            vmem_limit_bytes=vmem_limit,
        ),
        cost_estimate=cost,
    )(p2d, t2d)

    total = jnp.sum(partials)
    if tail:
        total = total + _charbonnier_sum_host(
            p_flat[rows * _LANES:], t_flat[rows * _LANES:], eps2)
    mean = total / jnp.float32(n)
    return mean.astype(predicted.dtype)


if __name__ == "__main__":
    key = jax.random.PRNGKey(0)
    k1, k2, k3, k4, k5, k6 = jax.random.split(key, 6)
    eps = 1e-08

    # NCHW-shaped inputs, matching the PyTorch module's typical usage.
    predicted = jax.random.normal(k1, (2, 4, 16, 16), dtype=jnp.float32)
    target = jax.random.normal(k2, (2, 4, 16, 16), dtype=jnp.float32)
    loss = jax.block_until_ready(charbonnier_loss(predicted, target, epsilon=eps))
    ref = jnp.mean(jnp.sqrt((predicted - target) ** 2 + eps ** 2))
    assert jnp.allclose(loss, ref, rtol=1e-5, atol=1e-6), (loss, ref)

    # Ragged-size check (n % 128 != 0): masked edge rows + host-side tail.
    p2 = jax.random.normal(k3, (2, 3, 17, 13), dtype=jnp.float32)
    t2 = jax.random.normal(k4, (2, 3, 17, 13), dtype=jnp.float32)
    loss2 = jax.block_until_ready(charbonnier_loss(p2, t2, epsilon=eps))
    ref2 = jnp.mean(jnp.sqrt((p2 - t2) ** 2 + eps ** 2))
    assert jnp.allclose(loss2, ref2, rtol=1e-5, atol=1e-6), (loss2, ref2)

    # Multi-block path (small tile override forces several grid steps and,
    # on single-core chips, the 3-deep input buffering).
    p3 = jax.random.normal(k5, (2, 4, 32, 32), dtype=jnp.float32)
    t3 = jax.random.normal(k6, (2, 4, 32, 32), dtype=jnp.float32)
    loss3 = jax.block_until_ready(
        charbonnier_loss(p3, t3, epsilon=eps, block_rows=16))
    ref3 = jnp.mean(jnp.sqrt((p3 - t3) ** 2 + eps ** 2))
    assert jnp.allclose(loss3, ref3, rtol=1e-5, atol=1e-6), (loss3, ref3)

    print("KERNEL_OK")
</pallas_src>

<mosaic_0001>
module attributes {stable_mosaic.version = 11 : i64} {
  func.func @_charbonnier_kernel(%arg0: i32, %arg1: i32, %arg2: memref<16x128xf32, #tpu.memory_space<vmem>>, %arg3: memref<16x128xf32, #tpu.memory_space<vmem>>, %arg4: memref<8x128xf32, #tpu.memory_space<vmem>>) attributes {dimension_semantics = [#tpu.dimension_semantics<parallel>, #tpu.dimension_semantics<arbitrary>], iteration_bounds = array<i64: 1, 1>, scalar_prefetch = 0 : i64, scratch_operands = 0 : i64, tpu.core_type = #tpu.core_type<tc>, window_params = [{transform_indices = @transform_0, window_bounds = array<i64: 16, 128>}, {transform_indices = @transform_1, window_bounds = array<i64: 16, 128>}, {transform_indices = @transform_2, window_bounds = array<i64: 8, 128>}]} {
    %c0_i32 = arith.constant 0 : i32
    %0 = arith.cmpi eq, %arg1, %c0_i32 : i32
    %1 = arith.extui %0 : i1 to i32
    %c0_i32_0 = arith.constant 0 : i32
    %2 = arith.cmpi ne, %1, %c0_i32_0 : i32
    scf.if %2 {
      %cst_8 = arith.constant 0.000000e+00 : f32
      %18 = vector.broadcast %cst_8 : f32 to vector<8x128xf32>
      %c0_9 = arith.constant 0 : index
      %c0_10 = arith.constant 0 : index
      %19 = vector.load %arg4[%c0_9, %c0_10] : memref<8x128xf32, #tpu.memory_space<vmem>>, vector<8x128xf32>
      tpu.vector_store %arg4[%c0_9, %c0_10], %18 {strides = array<i32>} : memref<8x128xf32, #tpu.memory_space<vmem>>, vector<8x128xf32>,
    } else {
    }
    %c0 = arith.constant 0 : index
    %c0_1 = arith.constant 0 : index
    %3 = vector.load %arg2[%c0, %c0_1] : memref<16x128xf32, #tpu.memory_space<vmem>>, vector<16x128xf32>
    %c0_2 = arith.constant 0 : index
    %c0_3 = arith.constant 0 : index
    %4 = vector.load %arg3[%c0_2, %c0_3] : memref<16x128xf32, #tpu.memory_space<vmem>>, vector<16x128xf32>
    %5 = arith.subf %3, %4 : vector<16x128xf32>
    %6 = arith.mulf %5, %5 : vector<16x128xf32>
    %cst = arith.constant 1.000000e-16 : f32
    %7 = vector.broadcast %cst : f32 to vector<16x128xf32>
    %8 = arith.addf %6, %7 : vector<16x128xf32>
    %9 = math.sqrt %8 : vector<16x128xf32>
    %c1_i32 = arith.constant 1 : i32
    %10 = arith.muli %arg0, %c1_i32 : i32
    %11 = arith.addi %10, %arg1 : i32
    %c0_i32_4 = arith.constant 0 : i32
    %12 = arith.cmpi slt, %11, %c0_i32_4 : i32
    %13 = arith.extui %12 : i1 to i32
    %c0_i32_5 = arith.constant 0 : i32
    %14 = arith.cmpi ne, %13, %c0_i32_5 : i32
    scf.if %14 {
      %c0_8 = arith.constant 0 : index
      %c0_9 = arith.constant 0 : index
      %18 = vector.load %arg4[%c0_8, %c0_9] : memref<8x128xf32, #tpu.memory_space<vmem>>, vector<8x128xf32>
      %19 = vector.shape_cast %9 : vector<16x128xf32> to vector<2x8x128xf32>
      %cst_10 = arith.constant dense<0.000000e+00> : vector<8x128xf32>
      %20 = vector.multi_reduction <add>, %19, %cst_10 [0] : vector<2x8x128xf32> to vector<8x128xf32>
      %21 = arith.addf %18, %20 : vector<8x128xf32>
      %c0_11 = arith.constant 0 : index
      %c0_12 = arith.constant 0 : index
      %22 = vector.load %arg4[%c0_11, %c0_12] : memref<8x128xf32, #tpu.memory_space<vmem>>, vector<8x128xf32>
      tpu.vector_store %arg4[%c0_11, %c0_12], %21 {strides = array<i32>} : memref<8x128xf32, #tpu.memory_space<vmem>>, vector<8x128xf32>,
    } else {
    }
    %c0_i32_6 = arith.constant 0 : i32
    %15 = arith.cmpi sge, %11, %c0_i32_6 : i32
    %16 = arith.extui %15 : i1 to i32
    %c0_i32_7 = arith.constant 0 : i32
    %17 = arith.cmpi ne, %16, %c0_i32_7 : i32
    scf.if %17 {
      %18 = tpu.iota {dimensions = array<i32: 0>} : vector<16x128xi32>
      %c16_i32 = arith.constant 16 : i32
      %19 = arith.muli %11, %c16_i32 : i32
      %20 = vector.broadcast %19 : i32 to vector<16x128xi32>
      %21 = arith.addi %20, %18 : vector<16x128xi32>
      %c16_i32_8 = arith.constant 16 : i32
      %22 = vector.broadcast %c16_i32_8 : i32 to vector<16x128xi32>
      %23 = arith.cmpi slt, %21, %22 : vector<16x128xi32>
      %cst_9 = arith.constant 0.000000e+00 : f32
      %24 = vector.broadcast %cst_9 : f32 to vector<16x128xf32>
      %25 = arith.select %23, %9, %24 : vector<16x128xi1>, vector<16x128xf32>
      %c0_10 = arith.constant 0 : index
      %c0_11 = arith.constant 0 : index
      %26 = vector.load %arg4[%c0_10, %c0_11] : memref<8x128xf32, #tpu.memory_space<vmem>>, vector<8x128xf32>
      %27 = vector.shape_cast %25 : vector<16x128xf32> to vector<2x8x128xf32>
      %cst_12 = arith.constant dense<0.000000e+00> : vector<8x128xf32>
      %28 = vector.multi_reduction <add>, %27, %cst_12 [0] : vector<2x8x128xf32> to vector<8x128xf32>
      %29 = arith.addf %26, %28 : vector<8x128xf32>
      %c0_13 = arith.constant 0 : index
      %c0_14 = arith.constant 0 : index
      %30 = vector.load %arg4[%c0_13, %c0_14] : memref<8x128xf32, #tpu.memory_space<vmem>>, vector<8x128xf32>
      tpu.vector_store %arg4[%c0_13, %c0_14], %29 {strides = array<i32>} : memref<8x128xf32, #tpu.memory_space<vmem>>, vector<8x128xf32>,
    } else {
    }
    return
  }
  func.func @transform_0(%arg0: i32, %arg1: i32) -> (i32, i32) {
    %c1_i32 = arith.constant 1 : i32
    %0 = arith.muli %arg0, %c1_i32 : i32
    %1 = arith.addi %0, %arg1 : i32
    %c0_i32 = arith.constant 0 : i32
    %2 = arith.minsi %1, %c0_i32 : i32
    %c0_i32_0 = arith.constant 0 : i32
    %c0_i32_1 = arith.constant 0 : i32
    return %2, %c0_i32_0 : i32, i32
  }
  func.func @transform_1(%arg0: i32, %arg1: i32) -> (i32, i32) {
    %c1_i32 = arith.constant 1 : i32
    %0 = arith.muli %arg0, %c1_i32 : i32
    %1 = arith.addi %0, %arg1 : i32
    %c0_i32 = arith.constant 0 : i32
    %2 = arith.minsi %1, %c0_i32 : i32
    %c0_i32_0 = arith.constant 0 : i32
    %c0_i32_1 = arith.constant 0 : i32
    return %2, %c0_i32_0 : i32, i32
  }
  func.func @transform_2(%arg0: i32, %arg1: i32) -> (i32, i32) {
    %c0_i32 = arith.constant 0 : i32
    %c0_i32_0 = arith.constant 0 : i32
    return %arg0, %c0_i32 : i32, i32
  }
}

</mosaic_0001>

<bundles_post_ra>
// kernel: tpu_custom_call.1
= control target key start
LH: loop header
LB: loop body
LE: loop exit
PB: predicated region body
PF: predicated region fallthrough
CT: control target
= control target key end

     0   :  { %7 = vsyncpa [#allocation3], 0  ;;  %s242_s0 = inlined_call_operand.hbm [shape: f32[16,128], index: 0, kind: input, shape index: {}]   ;;  %s243_s1 = inlined_call_operand.hbm [shape: f32[16,128], index: 1, kind: input, shape index: {}]   ;;  %s244_s2 = inlined_call_operand.hbm [shape: f32[8,128], index: 2, kind: output, shape index: {}]  }
   0x1   :  { %8 = vsyncpa [#allocation6], 0 }
   0x2   :  { %9 = vsyncpa [#allocation4], 0  ;;  %s213_s9 = smov [#allocation2]  }
   0x3   :  { %s21_s10 = sshll.u32 %s213_s9, 4  ;;  %s22_s10 = int_to_ptr.vmem [resolvable:$true] %s21_s10 }
   0x4   :  { %s155_s11 = scalar_lea.vmem %s22_s10, 256  ;;  %p160_p1 = scmp.lt.s32.totalorder %s22_s10, %s22_s10 }
   0x5   :  { %p156_p0 = scmp.ne.s32.totalorder %s22_s10, %s155_s11  ;;  %p161_p2 = scmp.lt.s32.totalorder %s155_s11, %s155_s11 }
   0x7   :  { %p162_p3 = por %p161_p2, %p160_p1 }
   0x9   :  { %p163_p4 = pnand %p162_p3, %p156_p0 }
   0xb   :  { %166 = shalt.err (!%p163_p4)
}
   0xc   :  { %s214_s12 = smov 128   ;;  %s215_s13 = smov 8  }
   0xd   :  { %27 = dma.hbm_to_vmem [thread:$0]  %s242_s0, 256, %s22_s10, [#allocation3], %s214_s12, %s214_s12, %s215_s13  }
   0xe   :  { %s216_s16 = smov [#allocation5]  }
   0xf   :  { %s39_s17 = sshll.u32 %s216_s16, 4  ;;  %s40_s17 = int_to_ptr.vmem [resolvable:$true] %s39_s17 }
  0x10   :  { %s175_s18 = scalar_lea.vmem %s40_s17, 256  ;;  %p180_p6 = scmp.lt.s32.totalorder %s40_s17, %s40_s17 }
  0x11   :  { %p176_p5 = scmp.ne.s32.totalorder %s40_s17, %s175_s18  ;;  %p181_p7 = scmp.lt.s32.totalorder %s175_s18, %s175_s18 }
  0x13   :  { %p182_p8 = por %p181_p7, %p180_p6 }
  0x15   :  { %p183_p9 = pnand %p182_p8, %p176_p5 }
  0x17   :  { %186 = shalt.err (!%p183_p9)
}
  0x18   :  { %45 = dma.hbm_to_vmem [thread:$0]  %s243_s1, 256, %s40_s17, [#allocation6], %s214_s12, %s214_s12, %s215_s13  }
  0x19   :  { %207 = dma.done.wait [#allocation3], 256  }
  0x1a   :  { %208 = vsyncadd [#allocation3], 4294967040 }
  0x1b   :  { %209 = dma.done.wait [#allocation6], 256  }
  0x1c   :  { %210 = vsyncadd [#allocation6], 4294967040  ;;  %v65_v0 = vld [vmem:[#allocation2] sm:$0xff]  ;;  %v66_v1 = vld [vmem:[#allocation2 + $0x8] sm:$0xff]  ;;  %s217_s0 = smov [#allocation7]  }
  0x1d   :  { %v67_v2 = vld [vmem:[#allocation5] sm:$0xff]  ;;  %v68_v3 = vld [vmem:[#allocation5 + $0x8] sm:$0xff]  ;;  %s123_s1 = sshll.u32 %s217_s0, 4  ;;  %s124_s1 = int_to_ptr.vmem [resolvable:$true] %s123_s1 }
  0x1e   :  { %v69_v4 = vsub.f32 %v65_v0, %v67_v2  ;;  %v70_v5 = vsub.f32 %v66_v1, %v68_v3  ;;  %s187_s21 = scalar_lea.vmem %s124_s1, 128  ;;  %p192_p11 = scmp.lt.s32.totalorder %s124_s1, %s124_s1 }
  0x1f   :  { %p188_p10 = scmp.ne.s32.totalorder %s124_s1, %s187_s21  ;;  %p193_p12 = scmp.lt.s32.totalorder %s187_s21, %s187_s21 }
  0x20   :  { %v71_v6 = vmul.f32 %v69_v4, %v69_v4  ;;  %v72_v7 = vmul.f32 %v70_v5, %v70_v5 }
  0x21   :  { %p194_p13 = por %p193_p12, %p192_p11 }
  0x22   :  { %v73_v8 = vadd.f32 1e-16, %v71_v6  ;;  %v74_v9 = vadd.f32 1e-16, %v72_v7 }
  0x23   :  { %p195_p0 = pnand %p194_p13, %p188_p10 }
  0x24   :  { %143 = vrsqrt.f32 %v73_v8  ;;  %vm77_vm0 = vcmp.eq.f32.partialorder %v73_v8, inf  ;;  %v80_v11 = vand.u32 2147483648, %v73_v8  ;;  %vm79_vm1 = vcmp.eq.f32.partialorder %v73_v8, 0.0 }
  0x25   :  { %145 = vrsqrt.f32 %v74_v9  ;;  %vm84_vm2 = vcmp.eq.f32.partialorder %v74_v9, inf  ;;  %v87_v14 = vand.u32 2147483648, %v74_v9  ;;  %vm86_vm3 = vcmp.eq.f32.partialorder %v74_v9, 0.0 }
  0x31   :  { %v144_v10 = vpop.eup %143 }
  0x32   :  { %v146_v12 = vpop.eup %145  ;;  %v76_v13 = vmul.f32 %v144_v10, %v73_v8 }
  0x33   :  { %v83_v15 = vmul.f32 %v146_v12, %v74_v9 }
  0x34   :  { %v78_v16 = vsel %vm77_vm0, %v73_v8, %v76_v13 }
  0x35   :  { %v81_v17 = vsel %vm79_vm1, %v80_v11, %v78_v16  ;;  %v85_v18 = vsel %vm84_vm2, %v74_v9, %v83_v15 }
  0x36   :  { %v88_v19 = vsel %vm86_vm3, %v87_v14, %v85_v18 }
  0x37   :  { %v114_v20 = vadd.f32 %v88_v19, %v81_v17 }
  0x39   :  { %116 = vst [vmem:[#allocation7] sm:$0xff] %v114_v20 }
  0x3a   :  { %198 = shalt.err (!%p195_p0)
}
  0x3b   :  { %126 = dma.vmem_to_hbm [thread:$0]  %s124_s1, 128, %s244_s2, [#allocation4]  }
  0x3c   :  { %211 = dma.done.wait [#allocation4], 128  }
  0x3d   :  { %212 = vsyncadd [#allocation4], 4294967168 }
  0x3e   :  { %130 = vsyncpa [#allocation3], 1 }
  0x3f   :  { %131 = vsyncpa [#allocation6], 1 }
  0x40   :  { %132 = vsyncpa [#allocation4], 1 }

</bundles_post_ra>
